<compile_context>
chip_gen: v7x
topology: tpu7x:2x2x1
jax: 0.10.0
libtpu: 0.0.40
codegen_flags: <defaults>
</compile_context>

<pallas_src>
import jax
import jax.numpy as jnp
from jax.experimental import pallas as pl
from jax.experimental.pallas import tpu as pltpu


# --------------------------------------------------------------------------
# Kernel
# --------------------------------------------------------------------------
def _rel_root_depth_loss_kernel(out_ref, gt_ref, valid_ref, loss_ref):
    # Pure VPU elementwise: |out - gt| * valid.
    # valid may arrive as bool/uint8/int8 (1 B/elem HBM stream); widening to
    # the output dtype inside the kernel is a free VPU op.
    diff = out_ref[...] - gt_ref[...]
    loss_ref[...] = jnp.abs(diff) * valid_ref[...].astype(loss_ref.dtype)


# --------------------------------------------------------------------------
# Helpers
# --------------------------------------------------------------------------
def _round_up(x, m):
    return (x + m - 1) // m * m


def _cdiv(a, b):
    return (a + b - 1) // b


def _tpu_vmem_bytes():
    try:
        return int(pltpu.get_tpu_info().vmem_capacity_bytes)
    except Exception:
        return 64 << 20  # conservative: v7x physical VMEM per TensorCore


def _num_tensorcores():
    """Chips whose Pallas 'parallel' grid axes are sharded across 2 TCs."""
    try:
        kind = jax.devices()[0].device_kind.lower()
    except Exception:
        return 1
    for tag in ("v7", "v5p", "v4", "v3"):
        if tag in kind:
            return 2
    return 1


def _choose_view(shape, total, row_align):
    """Pick a zero-copy 2-D view (rows, cols) of the flattened input."""
    # 1) fully lane-dense flat view: unmasked full-lane stores, zero waste.
    for lane in (1024, 512, 256, 128):
        if total % lane == 0 and (total // lane) >= row_align:
            return total // lane, lane
    # 2) collapse leading dims; ragged tails handled by masked trailing blocks.
    if len(shape) >= 2:
        cols = shape[-1]
        rows = total // cols
        if cols >= 128 and rows >= row_align:
            return rows, cols
    return None


# --------------------------------------------------------------------------
# Wrapper
# --------------------------------------------------------------------------
def rel_root_depth_loss(root_depth_out, root_depth_gt, root_valid,
                        *, col_tile=1024, target_step_bytes=6 << 20,
                        min_pallas_elements=1 << 16):
    """Pallas implementation of RelRootDepthLoss.forward.

    loss = |root_depth_out - root_depth_gt| * root_valid, elementwise.
    `root_valid` may be float, int8/uint8 or bool.  No host-side padding or
    copies: inputs are re-viewed (free reshape) and ragged tiles are masked
    inside the pipeline.
    """
    assert root_depth_out.shape == root_depth_gt.shape == root_valid.shape
    assert root_depth_out.dtype == root_depth_gt.dtype
    out_dtype = root_depth_out.dtype
    orig_shape = root_depth_out.shape
    total = int(root_depth_out.size)

    def _xla_fallback():
        return jnp.abs(root_depth_out - root_depth_gt) * root_valid.astype(out_dtype)

    # Tiny inputs: a standalone pallas_call only loses to the fused XLA op.
    if total < min_pallas_elements:
        return _xla_fallback()

    mask_itemsize = jnp.dtype(root_valid.dtype).itemsize
    # (32,128) minimum tile for 8-bit dtypes; (8,128) otherwise.
    row_align = 32 if mask_itemsize == 1 else 8

    view = _choose_view(orig_shape, total, row_align)
    if view is None:
        # Awkward shape (e.g. odd 1-D length): the fused XLA op is already
        # near roofline for this memory-bound elementwise op.
        return _xla_fallback()
    rows, cols = view

    # ---- Column (lane) tile: multiple of 128 when possible ---------------
    if cols % 128 == 0:
        tn = min(cols, col_tile)
    elif cols > col_tile:
        tn = col_tile          # ragged trailing column block (masked stores)
    else:
        tn = cols              # full-dim block

    # ---- Row (sublane) tile: ~target_step_bytes of traffic per grid step --
    itemsize_sum = (jnp.dtype(root_depth_out.dtype).itemsize
                    + jnp.dtype(root_depth_gt.dtype).itemsize
                    + mask_itemsize
                    + jnp.dtype(out_dtype).itemsize)
    tm = target_step_bytes // (tn * itemsize_sum)
    tm = max(row_align, min(tm, rows, 2048))
    tm = max(row_align, (tm // row_align) * row_align)

    # v7x / megacore only: even (>=2) number of row blocks so the parallel
    # grid splits evenly across TensorCores.  Never shrink tiles on 1-TC chips.
    n_tc = _num_tensorcores()
    if n_tc >= 2 and rows >= 2 * row_align:
        gr = max(2, _cdiv(rows, tm))
        gr += gr % 2
        tm = max(row_align, min(tm, _round_up(_cdiv(rows, gr), row_align)))

    gr = _cdiv(rows, tm)
    gc = _cdiv(cols, tn)

    # Zero-copy 2-D views (reshape of contiguous row-major data is a bitcast).
    o2 = root_depth_out.reshape(rows, cols)
    g2 = root_depth_gt.reshape(rows, cols)
    v2 = root_valid.reshape(rows, cols)

    spec = pl.BlockSpec((tm, tn), lambda i, j: (i, j))

    # Explicit VMEM budget: 2 pipeline buffers * (3 input + 1 output) blocks
    # plus headroom, capped generation-aware (v7x has only 64 MiB physical).
    block_bytes = tm * tn * itemsize_sum
    vmem_limit = int(min(2 * block_bytes + (8 << 20), _tpu_vmem_bytes() // 2))

    bytes_accessed = total * itemsize_sum  # 2 f32 in + mask in + f32 out

    loss2 = pl.pallas_call(
        _rel_root_depth_loss_kernel,
        out_shape=jax.ShapeDtypeStruct((rows, cols), out_dtype),
        grid=(gr, gc),
        in_specs=[spec, spec, spec],
        out_specs=spec,
        compiler_params=pltpu.CompilerParams(
            dimension_semantics=("parallel", "parallel"),
            vmem_limit_bytes=vmem_limit),
        cost_estimate=pl.CostEstimate(
            flops=2 * total, transcendentals=0,
            bytes_accessed=bytes_accessed),
    )(o2, g2, v2)

    # TODO(synk): could alias the output onto o2 via input_output_aliases when
    # the caller donates root_depth_out (saves an HBM allocation, not traffic).
    return loss2.reshape(orig_shape)


# --------------------------------------------------------------------------
# Demo / self-test
# --------------------------------------------------------------------------
if __name__ == "__main__":
    key = jax.random.PRNGKey(0)
    k1, k2, k3, k4, k5, k6, k7, k8, k9 = jax.random.split(key, 9)

    # Case 1: non-aligned (37, 7000) f32 with uint8 mask -> zero-copy collapse
    # view, ragged row/column blocks handled by masked trailing blocks.
    B, N = 37, 7000
    d_out = jax.random.normal(k1, (B, N), dtype=jnp.float32)
    d_gt = jax.random.normal(k2, (B, N), dtype=jnp.float32)
    valid_u8 = (jax.random.uniform(k3, (B, N)) > 0.5).astype(jnp.uint8)

    loss = jax.block_until_ready(rel_root_depth_loss(d_out, d_gt, valid_u8))
    ref = jnp.abs(d_out - d_gt) * valid_u8.astype(jnp.float32)
    assert loss.shape == ref.shape and loss.dtype == ref.dtype
    assert jnp.allclose(loss, ref, atol=1e-6), "mismatch (collapse path)"

    # Case 2: (64, 64, 128) f32 with f32 mask -> fully lane-dense flat view
    # (total % 1024 == 0), unmasked full-lane stores.
    shp = (64, 64, 128)
    d_out2 = jax.random.normal(k4, shp, dtype=jnp.float32)
    d_gt2 = jax.random.normal(k5, shp, dtype=jnp.float32)
    valid_f = (jax.random.uniform(k6, shp) > 0.5).astype(jnp.float32)

    loss2 = jax.block_until_ready(rel_root_depth_loss(d_out2, d_gt2, valid_f))
    ref2 = jnp.abs(d_out2 - d_gt2) * valid_f
    assert jnp.allclose(loss2, ref2, atol=1e-6), "mismatch (flat path)"

    # Case 3: tiny shape -> fused XLA fallback (kernel launch not worth it).
    Bs, Ns = 2, 64
    s_out = jax.random.normal(k7, (Bs, Ns), dtype=jnp.float32)
    s_gt = jax.random.normal(k8, (Bs, Ns), dtype=jnp.float32)
    s_valid = (jax.random.uniform(k9, (Bs, Ns)) > 0.5).astype(jnp.float32)

    loss3 = jax.block_until_ready(rel_root_depth_loss(s_out, s_gt, s_valid))
    ref3 = jnp.abs(s_out - s_gt) * s_valid
    assert jnp.allclose(loss3, ref3, atol=1e-6), "mismatch (fallback path)"

    print("KERNEL_OK")
</pallas_src>

<mosaic_0001>
module attributes {stable_mosaic.version = 11 : i64} {
  func.func @_rel_root_depth_loss_kernel(%arg0: i32, %arg1: i32, %arg2: memref<32x1024xf32, #tpu.memory_space<vmem>>, %arg3: memref<32x1024xf32, #tpu.memory_space<vmem>>, %arg4: memref<32x1024xi8, #tpu.memory_space<vmem>>, %arg5: memref<32x1024xf32, #tpu.memory_space<vmem>>) attributes {dimension_semantics = [#tpu.dimension_semantics<parallel>, #tpu.dimension_semantics<parallel>], iteration_bounds = array<i64: 2, 7>, scalar_prefetch = 0 : i64, scratch_operands = 0 : i64, tpu.core_type = #tpu.core_type<tc>, window_params = [{transform_indices = @transform_0, window_bounds = array<i64: 32, 1024>}, {transform_indices = @transform_1, window_bounds = array<i64: 32, 1024>}, {transform_indices = @transform_2, window_bounds = array<i64: 32, 1024>}, {transform_indices = @transform_3, window_bounds = array<i64: 32, 1024>}]} {
    %c0 = arith.constant 0 : index
    %c0_0 = arith.constant 0 : index
    %0 = vector.load %arg2[%c0, %c0_0] : memref<32x1024xf32, #tpu.memory_space<vmem>>, vector<32x1024xf32>
    %c0_1 = arith.constant 0 : index
    %c0_2 = arith.constant 0 : index
    %1 = vector.load %arg3[%c0_1, %c0_2] : memref<32x1024xf32, #tpu.memory_space<vmem>>, vector<32x1024xf32>
    %2 = arith.subf %0, %1 : vector<32x1024xf32>
    %3 = math.absf %2 : vector<32x1024xf32>
    %c0_3 = arith.constant 0 : index
    %c0_4 = arith.constant 0 : index
    %4 = vector.load %arg4[%c0_3, %c0_4] : memref<32x1024xi8, #tpu.memory_space<vmem>>, vector<32x1024xi8>
    %5 = arith.uitofp %4 : vector<32x1024xi8> to vector<32x1024xf32>
    %6 = arith.mulf %3, %5 : vector<32x1024xf32>
    %c0_5 = arith.constant 0 : index
    %c0_6 = arith.constant 0 : index
    %7 = vector.load %arg5[%c0_5, %c0_6] : memref<32x1024xf32, #tpu.memory_space<vmem>>, vector<32x1024xf32>
    tpu.vector_store %arg5[%c0_5, %c0_6], %6 {strides = array<i32>} : memref<32x1024xf32, #tpu.memory_space<vmem>>, vector<32x1024xf32>,
    return
  }
  func.func @transform_0(%arg0: i32, %arg1: i32) -> (i32, i32) {
    %c0_i32 = arith.constant 0 : i32
    return %arg0, %arg1 : i32, i32
  }
  func.func @transform_1(%arg0: i32, %arg1: i32) -> (i32, i32) {
    %c0_i32 = arith.constant 0 : i32
    return %arg0, %arg1 : i32, i32
  }
  func.func @transform_2(%arg0: i32, %arg1: i32) -> (i32, i32) {
    %c0_i32 = arith.constant 0 : i32
    return %arg0, %arg1 : i32, i32
  }
  func.func @transform_3(%arg0: i32, %arg1: i32) -> (i32, i32) {
    %c0_i32 = arith.constant 0 : i32
    return %arg0, %arg1 : i32, i32
  }
}

</mosaic_0001>

<bundles_post_ra>
// kernel: tpu_custom_call.1
= control target key start
LH: loop header
LB: loop body
LE: loop exit
PB: predicated region body
PF: predicated region fallthrough
CT: control target
= control target key end

     0   :  { %s1653_s0 = inlined_call_operand.hbm [shape: f32[37,7000], index: 0, kind: input, shape index: {}]   ;;  %s1654_s1 = inlined_call_operand.hbm [shape: f32[37,7000], index: 1, kind: input, shape index: {}]   ;;  %s1655_s2 = inlined_call_operand.hbm [shape: u8[37,7000], index: 2, kind: input, shape index: {}]   ;;  %s1656_s3 = inlined_call_operand.hbm [shape: f32[37,7000], index: 3, kind: output, shape index: {}]  }
   0x1   :  { %1662 = sst [smem:[#allocation17_spill]] %s1656_s3 }
   0x2   :  { %8 = vsyncpa [#allocation3], 0 }
   0x3   :  { %10 = vsyncpa [#allocation3 + $0x1], 0 }
   0x4   :  { %11 = vsyncpa [#allocation6], 0 }
   0x5   :  { %13 = vsyncpa [#allocation6 + $0x1], 0 }
   0x6   :  { %14 = vsyncpa [#allocation4], 0 }
   0x7   :  { %16 = vsyncpa [#allocation4 + $0x1], 0  ;;  %s1179_s12 = smov 0   ;;  %s1181_s13 = smov 0  }
   0x8   :  { %s1183_s14 = smov 0   ;;  %s1185_s15 = smov 0  }
   0x9   :  { %s1187_s16 = smov 0   ;;  %s1189_s17 = smov 0  }
   0xa   :  { %s1191_s18 = smov 0   ;;  %s1193_s19 = smov 0  }
   0xb LB: > { %1663 = sst [smem:[#allocation12_spill]] %s1117_s12  ;;  %s1220_s20 = sadd.s32 4294967295, %s1145_s19   ;;  %s1145_s19 = sphi %s1193_s19, %s22_s19   ;;  %s1141_s18 = sphi %s1191_s18, %s1686_s18   ;;  %s1137_s17 = sphi %s1189_s17, %s1685_s17   ;;  %s1133_s16 = sphi %s1187_s16, %s1684_s16   ;;  %s1129_s15 = sphi %s1185_s15, %s1683_s15   ;;  %s1125_s14 = sphi %s1183_s14, %s1682_s14   ;;  %s1121_s13 = sphi %s1181_s13, %s1681_s13   ;;  %s1117_s12 = sphi %s1179_s12, %s1680_s12  }
   0xc   : > { %s832_s21 = sadd.s32 4294967294, %s1145_s19   ;;  %s31_s22 = sadd.s32 1, %s1137_s17 }
   0xd   : > { %p32_p0 = scmp.ge.s32.totalorder %s31_s22, 7  ;;  %s34_s23 = sadd.s32 1, %s1141_s18 }
   0xe   : > { %p50_p1 = scmp.ne.s32.totalorder %s1125_s14, %s1121_s13  ;;  %p51_p2 = scmp.eq.s32.totalorder %s1145_s19, 0 }
   0xf   : > { %s1688_s22 = smov (%p32_p0, %s31_s22), 0  ;;  %s1690_s23 = smov (!%p32_p0, %s34_s23), %s1141_s18 }
  0x10   : > { %1664 = sst [smem:[#allocation13_spill]] %s1688_s22  ;;  %s39_s24 = ssub.s32 %s1137_s17, %s1688_s22 }
  0x11   : > { %p1233_p3 = por %p51_p2, %p50_p1  ;;  %p36_p4 = scmp.ge.s32.totalorder %s1690_s23, 2 }
  0x12   : > { %p56_p5 = scmp.ne.s32.totalorder %s1121_s13, %s1117_s12  ;;  %p57_p6 = scmp.eq.s32.totalorder %s1220_s20, 0 }
  0x13   : > { %p138_p7 = scmp.eq.s32.totalorder %s1220_s20, 13  ;;  %s1692_s23 = smov (%p36_p4, %s1690_s23), 0 }
  0x14   : > { %1666 = sst [smem:[#allocation14_spill]] %s1692_s23  ;;  %p1243_p8 = por %p57_p6, %p56_p5 }
  0x15   : > { %p1247_p9 = por %p138_p7, %p50_p1  ;;  %s38_s28 = ssub.s32 %s1141_s18, %s1692_s23 }
  0x16   : > { %p144_p10 = scmp.eq.s32.totalorder %s832_s21, 13  ;;  %s40_s29 = sor.u32 %s39_s24, %s38_s28 }
  0x17   : > { %s1668_s27 = scalar_select %p1247_p9, 1, 0 }
  0x18   : > { %s43_s30 = sadd.s32 1, %s1125_s14  ;;  %p41_p11 = scmp.eq.s32.totalorder %s40_s29, 0 }
  0x19   : > { %p1254_p12 = por %p144_p10, %p56_p5  ;;  %p834_p13 = scmp.ge.s32.totalorder %s1145_s19, 14 }
  0x1a   : > { %s1259_s5 = scalar_select %p41_p11, %s1125_s14, %s43_s30  }
  0x1b   : > { %s1669_s4 = scalar_select %p1254_p12, 1, 0 }
  0x1c   : > { %1671 = sst [smem:[#allocation16_spill]] %s1259_s5  ;;  %160 = sbr.rel (%p834_p13) target bundleno = 152 (0x98), region = 16 }
  0x1d   : > { %1670 = sst [smem:[#allocation15_spill]] %s1669_s4 }
  0x23   : > { %163 = sbr.rel (!%p1233_p3) target bundleno = 74 (0x4a), region = 20  ;;  %s164_s6 = sand.u32 (%p1233_p3), 1, %s1125_s14  }
  0x24   : > { %s836_s7 = sshll.u32 (%p1233_p3), %s1141_s18, 2  ;;  %s835_s8 = sshll.u32 (%p1233_p3), %s164_s6, 8 }
  0x25   : > { %s837_s9 = sshll.u32 (%p1233_p3), %s1137_s17, 3  ;;  %s171_s10 = ssub.s32 (%p1233_p3), 5, %s836_s7 }
  0x26   : > { %s175_s11 = ssub.s32 (%p1233_p3), 55, %s837_s9  ;;  %p172_p0 = scmp.lt.s32.totalorder (%p1233_p3), %s171_s10, 4 }
  0x27   : > { %p176_p1 = scmp.lt.s32.totalorder (%p1233_p3), %s175_s11, 8  ;;  %s1273_s29 = scalar_lea.sflag (%p1233_p3), [#allocation3], %s164_s6 }
  0x28   : > { %s168_s30 = scalar_lea.vmem (%p1233_p3), [#allocation2], %s835_s8 }
  0x2a   : > { %s1694_s10 = smov (!%p172_p0, %s171_s10), 4  ;;  %s1696_s11 = smov (!%p176_p1, %s175_s11), 8 }
  0x2b   : > { %s838_s21 = sshll.u32 %s1694_s10, 7 }
  0x2c   : > { %s1270_s24 = smul.u32 %s838_s21, %s1696_s11 }
  0x2e   : > { %s180_s28 = ssub.s32 4096, %s1270_s24 }
  0x2f   : > { %181 = vsyncadd %s1273_s29, %s180_s28  ;;  %p839_p2 = scmp.ne.s32.totalorder %s1270_s24, 0  ;;  %s874_s7 = smul.u32 220, %s1141_s18 }
  0x30   : > { %s842_s23 = sshll.u32 %s1696_s11, 3  ;;  %s189_s22 = sshll.u32 %s168_s30, 4  ;;  %s1281_s22 = int_to_ptr.vmem [resolvable:$true] %s189_s22 }
  0x31   : > { %s184_s5 = sadd.s32 %s874_s7, %s837_s9  ;;  %s188_s21 = smul.u32 %s842_s23, %s1694_s10 }
  0x32   : > { %s841_s4 = sshll.u32 %s184_s5, 7  ;;  %s963_s10 = scalar_lea.hbm %s1653_s0, 35200 }
  0x33   : > { %s1286_s8 = scalar_lea.hbm %s1653_s0, %s841_s4  ;;  %s1288_s28 = sshll.u32 %s188_s21, 4 }
  0x34   : > { %s959_s3 = scalar_lea.hbm %s1286_s8, %s1288_s28  ;;  %p964_p7 = scmp.lt.u32.totalorder %s1286_s8, %s1653_s0 }
  0x35   : > { %p960_p4 = scmp.ne.s32.totalorder %s1286_s8, %s959_s3  ;;  %p965_p10 = scmp.lt.u32.totalorder %s963_s10, %s959_s3 }
  0x36   : > { %p967_p13 = scmp.lt.u32.totalorder %s959_s3, %s1286_s8 }
  0x37   : > { %p961_p5 = pnand %p960_p4, %p839_p2  ;;  %p966_p11 = por %p965_p10, %p964_p7 }
  0x39   : > { %p962_p6 = pneg %p961_p5  ;;  %p968_p0 = por %p967_p13, %p966_p11 }
  0x3b   : > { %p969_p1 = pnand %p968_p0, %p962_p6 }
  0x3d   : > { %972 = shalt.err (!%p969_p1)
}
  0x3e   : > { %s973_s4 = scalar_lea.vmem %s1281_s22, %s1288_s28  ;;  %s1147_s7 = smov [#allocation2]  }
  0x3f   : > { %p974_p4 = scmp.ne.s32.totalorder %s1281_s22, %s973_s4  ;;  %s977_s21 = sshll.u32 %s1147_s7, 4  ;;  %s978_s21 = int_to_ptr.vmem [resolvable:$false] %s977_s21 }
  0x40   : > { %s979_s6 = scalar_lea.vmem %s978_s21, 8192  ;;  %p980_p9 = scmp.lt.s32.totalorder %s1281_s22, %s978_s21 }
  0x41   : > { %p975_p5 = pnand %p974_p4, %p839_p2  ;;  %p981_p7 = scmp.lt.s32.totalorder %s979_s6, %s973_s4 }
  0x43   : > { %p976_p12 = pneg %p975_p5  ;;  %p982_p10 = por %p981_p7, %p980_p9 }
  0x45   : > { %p983_p11 = pnand %p982_p10, %p976_p12 }
  0x47   : > { %986 = shalt.err (!%p983_p11)
}
  0x48   : > { %s1148_s3 = smov 7040   ;;  %s1149_s5 = smov 1024  }
  0x49   : > { %195 = dma.hbm_to_vmem [thread:$0]  (%p839_p2), %s1286_s8, %s1288_s28, %s1281_s22, %s1273_s29, %s1148_s3, %s1149_s5, %s842_s23  }
  0x4a PF: > { %198 = sbr.rel (!%p1233_p3) target bundleno = 113 (0x71), region = 24  ;;  %s199_s9 = sand.u32 (%p1233_p3), 1, %s1145_s19  }
  0x4b   : > { %s201_s10 = sand.u32 (%p1233_p3), 1, %s1125_s14   ;;  %s844_s12 = sshll.u32 (%p1233_p3), %s1141_s18, 2 }
  0x4c   : > { %s843_s30 = sshll.u32 (%p1233_p3), %s201_s10, 8  ;;  %s845_s4 = sshll.u32 (%p1233_p3), %s1137_s17, 3 }
  0x4d   : > { %s206_s7 = ssub.s32 (%p1233_p3), 5, %s844_s12  ;;  %s210_s21 = ssub.s32 (%p1233_p3), 55, %s845_s4 }
  0x4e   : > { %p207_p9 = scmp.lt.s32.totalorder (%p1233_p3), %s206_s7, 4  ;;  %p211_p12 = scmp.lt.s32.totalorder (%p1233_p3), %s210_s21, 8 }
  0x4f   : > { %s1329_s24 = scalar_lea.sflag (%p1233_p3), [#allocation6], %s199_s9  ;;  %s203_s29 = scalar_lea.vmem (%p1233_p3), [#allocation5], %s843_s30 }
  0x51   : > { %s1698_s7 = smov (!%p207_p9, %s206_s7), 4  ;;  %s1700_s21 = smov (!%p211_p12, %s210_s21), 8 }
  0x52   : > { %s846_s22 = sshll.u32 %s1698_s7, 7 }
  0x53   : > { %s1326_s23 = smul.u32 %s846_s22, %s1700_s21 }
  0x55   : > { %s215_s11 = ssub.s32 4096, %s1326_s23 }
  0x56   : > { %216 = vsyncadd %s1329_s24, %s215_s11  ;;  %p847_p2 = scmp.ne.s32.totalorder %s1326_s23, 0  ;;  %s875_s8 = smul.u32 220, %s1141_s18 }
  0x57   : > { %s850_s28 = sshll.u32 %s1700_s21, 3  ;;  %s224_s6 = sshll.u32 %s203_s29, 4  ;;  %s1337_s6 = int_to_ptr.vmem [resolvable:$true] %s224_s6 }
  0x58   : > { %s219_s3 = sadd.s32 %s875_s8, %s845_s4  ;;  %s223_s5 = smul.u32 %s850_s28, %s1698_s7 }
  0x59   : > { %s849_s10 = sshll.u32 %s219_s3, 7  ;;  %s991_s29 = scalar_lea.hbm %s1654_s1, 35200 }
  0x5a   : > { %s1342_s30 = scalar_lea.hbm %s1654_s1, %s849_s10  ;;  %s1344_s22 = sshll.u32 %s223_s5, 4 }
  0x5b   : > { %s987_s11 = scalar_lea.hbm %s1342_s30, %s1344_s22  ;;  %p992_p1 = scmp.lt.u32.totalorder %s1342_s30, %s1654_s1 }
  0x5c   : > { %p988_p6 = scmp.ne.s32.totalorder %s1342_s30, %s987_s11  ;;  %p993_p4 = scmp.lt.u32.totalorder %s991_s29, %s987_s11 }
  0x5d   : > { %p995_p7 = scmp.lt.u32.totalorder %s987_s11, %s1342_s30 }
  0x5e   : > { %p989_p13 = pnand %p988_p6, %p847_p2  ;;  %p994_p5 = por %p993_p4, %p992_p1 }
  0x60   : > { %p990_p0 = pneg %p989_p13  ;;  %p996_p10 = por %p995_p7, %p994_p5 }
  0x62   : > { %p997_p11 = pnand %p996_p10, %p990_p0 }
  0x64   : > { %1000 = shalt.err (!%p997_p11)
}
  0x65   : > { %s1001_s5 = scalar_lea.vmem %s1337_s6, %s1344_s22  ;;  %s1150_s10 = smov [#allocation5]  }
  0x66   : > { %p1002_p9 = scmp.ne.s32.totalorder %s1337_s6, %s1001_s5  ;;  %s1005_s9 = sshll.u32 %s1150_s10, 4  ;;  %s1006_s9 = int_to_ptr.vmem [resolvable:$false] %s1005_s9 }
  0x67   : > { %s1007_s12 = scalar_lea.vmem %s1006_s9, 8192  ;;  %p1008_p13 = scmp.lt.s32.totalorder %s1337_s6, %s1006_s9 }
  0x68   : > { %p1003_p12 = pnand %p1002_p9, %p847_p2  ;;  %p1009_p1 = scmp.lt.s32.totalorder %s1007_s12, %s1001_s5 }
  0x6a   : > { %p1004_p6 = pneg %p1003_p12  ;;  %p1010_p4 = por %p1009_p1, %p1008_p13 }
  0x6c   : > { %p1011_p5 = pnand %p1010_p4, %p1004_p6 }
  0x6e   : > { %1014 = shalt.err (!%p1011_p5)
}
  0x6f   : > { %s1151_s11 = smov 7040   ;;  %s1152_s4 = smov 1024  }
  0x70   : > { %230 = dma.hbm_to_vmem [thread:$0]  (%p847_p2), %s1342_s30, %s1344_s22, %s1337_s6, %s1329_s24, %s1151_s11, %s1152_s4, %s850_s28  }
  0x71 PF: > { %233 = sbr.rel (!%p1233_p3) target bundleno = 152 (0x98), region = 28  ;;  %s234_s7 = sand.u32 (%p1233_p3), 1, %s1145_s19  }
  0x72   : > { %s236_s29 = sand.u32 (%p1233_p3), 1, %s1125_s14   ;;  %s852_s3 = sshll.u32 (%p1233_p3), %s1141_s18, 2 }
  0x73   : > { %s851_s8 = sshll.u32 (%p1233_p3), %s236_s29, 6  ;;  %s853_s5 = sshll.u32 (%p1233_p3), %s1137_s17, 3 }
  0x74   : > { %s241_s10 = ssub.s32 (%p1233_p3), 5, %s852_s3  ;;  %s245_s9 = ssub.s32 (%p1233_p3), 55, %s853_s5 }
  0x75   : > { %p242_p0 = scmp.lt.s32.totalorder (%p1233_p3), %s241_s10, 4  ;;  %p246_p7 = scmp.lt.s32.totalorder (%p1233_p3), %s245_s9, 8 }
  0x76   : > { %s1385_s24 = scalar_lea.sflag (%p1233_p3), [#allocation6], %s234_s7  ;;  %s238_s28 = scalar_lea.vmem (%p1233_p3), [#allocation7], %s851_s8 }
  0x78   : > { %s1702_s10 = smov (!%p242_p0, %s241_s10), 4  ;;  %s1704_s9 = smov (!%p246_p7, %s245_s9), 8 }
  0x79   : > { %s854_s21 = sshll.u32 %s1702_s10, 5 }
  0x7a   : > { %s1382_s25 = smul.u32 %s854_s21, %s1704_s9 }
  0x7c   : > { %s250_s23 = ssub.s32 1024, %s1382_s25 }
  0x7d   : > { %251 = vsyncadd %s1385_s24, %s250_s23  ;;  %p855_p3 = scmp.ne.s32.totalorder %s1382_s25, 0  ;;  %s876_s6 = smul.u32 220, %s1141_s18 }
  0x7e   : > { %s858_s30 = sshll.u32 %s1704_s9, 1  ;;  %s259_s22 = sshll.u32 %s238_s28, 4  ;;  %s1393_s22 = int_to_ptr.vmem [resolvable:$true] %s259_s22 }
  0x7f   : > { %s254_s12 = sadd.s32 %s876_s6, %s853_s5  ;;  %s258_s11 = smul.u32 %s858_s30, %s1702_s10 }
  0x80   : > { %s857_s4 = sshll.u32 %s254_s12, 5  ;;  %s1019_s23 = scalar_lea.hbm %s1655_s2, 8800 }
  0x81   : > { %s1398_s8 = scalar_lea.hbm %s1655_s2, %s857_s4  ;;  %s1400_s3 = sshll.u32 %s258_s11, 4 }
  0x82   : > { %s1015_s21 = scalar_lea.hbm %s1398_s8, %s1400_s3  ;;  %p1020_p9 = scmp.lt.u32.totalorder %s1398_s8, %s1655_s2 }
  0x83   : > { %p1016_p2 = scmp.ne.s32.totalorder %s1398_s8, %s1015_s21  ;;  %p1021_p12 = scmp.lt.u32.totalorder %s1019_s23, %s1015_s21 }
  0x84   : > { %p1023_p13 = scmp.lt.u32.totalorder %s1015_s21, %s1398_s8 }
  0x85   : > { %p1017_p10 = pnand %p1016_p2, %p855_p3  ;;  %p1022_p6 = por %p1021_p12, %p1020_p9 }
  0x87   : > { %p1018_p11 = pneg %p1017_p10  ;;  %p1024_p1 = por %p1023_p13, %p1022_p6 }
  0x89   : > { %p1025_p4 = pnand %p1024_p1, %p1018_p11 }
  0x8b   : > { %1028 = shalt.err (!%p1025_p4)
}
  0x8c   : > { %s1029_s12 = scalar_lea.vmem %s1393_s22, %s1400_s3  ;;  %s1153_s11 = smov [#allocation7]  }
  0x8d   : > { %p1030_p5 = scmp.ne.s32.totalorder %s1393_s22, %s1029_s12  ;;  %s1033_s4 = sshll.u32 %s1153_s11, 4  ;;  %s1034_s4 = int_to_ptr.vmem [resolvable:$false] %s1033_s4 }
  0x8e   : > { %s1035_s7 = scalar_lea.vmem %s1034_s4, 2048  ;;  %p1036_p2 = scmp.lt.s32.totalorder %s1393_s22, %s1034_s4 }
  0x8f   : > { %p1031_p0 = pnand %p1030_p5, %p855_p3  ;;  %p1037_p10 = scmp.lt.s32.totalorder %s1035_s7, %s1029_s12 }
  0x91   : > { %p1032_p7 = pneg %p1031_p0  ;;  %p1038_p9 = por %p1037_p10, %p1036_p2 }
  0x93   : > { %p1039_p12 = pnand %p1038_p9, %p1032_p7 }
  0x95   : > { %1042 = shalt.err (!%p1039_p12)
}
  0x96   : > { %s1154_s29 = smov 1760   ;;  %s1155_s21 = smov 256  }
  0x97   : > { %265 = dma.hbm_to_vmem [thread:$0]  (%p855_p3), %s1398_s8, %s1400_s3, %s1393_s22, %s1385_s24, %s1154_s29, %s1155_s21, %s858_s30  }
  0x98 PF: > { %p859_p11 = scmp.ge.s32.totalorder %s1145_s19, 1  ;;  %p267_p6 = scmp.lt.s32.totalorder %s1145_s19, 15 }
  0x9a   : > { %p268_p13 = pnand %p859_p11, %p267_p6 }
  0x9b   : > { %s1432_s5 = sand.u32 (!%p268_p13), 1, %s1121_s13  }
  0x9c   : > { %271 = sbr.rel (%p268_p13) target bundleno = 256 (0x100), region = 32  ;;  %s1435_s10 = sshll.u32 (!%p268_p13), %s1432_s5, 8 }
  0x9d   : > { %s274_s25 = scalar_lea.sflag (!%p268_p13), [#allocation3], %s1432_s5  ;;  %s1439_s9 = scalar_lea.vmem (!%p268_p13), [#allocation2], %s1435_s10 }
  0xa3   : > { %1104 = dma.done.wait (%p1243_p8), %s274_s25, 4096  }
  0xa4   : > { %1106 = vsyncadd (%p1243_p8), %s274_s25, 4294963200  ;;  %s282_s24 = sand.u32 1, %s1220_s20   ;;  %s1447_s22 = scalar_lea.vmem [#allocation5], %s1435_s10 }
  0xa5   : > { %s283_s30 = scalar_lea.sflag [#allocation6], %s282_s24 }
  0xa6   : > { %1108 = dma.done.wait (%p1243_p8), %s283_s30, 5120  }
  0xa7   : > { %1110 = vsyncadd (%p1243_p8), %s283_s30, 4294962176  ;;  %s862_s8 = sshll.u32 %s1432_s5, 6  ;;  %v368_v0 = vld [vmem:[%s1439_s9] sm:$0xff]  ;;  %v369_v5 = vld [vmem:[%s1439_s9 + $0x8] sm:$0xff]  ;;  %s1480_s26 = scalar_lea.vmem [#allocation8], %s1435_s10 }
  0xa8   : > { %v400_v1 = vld [vmem:[%s1447_s22] sm:$0xff]  ;;  %s1456_s20 = scalar_lea.vmem [#allocation7], %s862_s8  ;;  %v401_v6 = vld [vmem:[%s1447_s22 + $0x8] sm:$0xff]  ;;  %v370_v8 = vld [vmem:[%s1439_s9 + $0x10] sm:$0xff]  ;;  %s665_s3 = scalar_lea.sflag [#allocation4], %s1432_s5 }
  0xa9   : > { %v496_v2 = vld [vmem:[%s1456_s20] sm:$0xff]  ;;  %v432_v3 = vsub.f32 %v368_v0, %v400_v1  ;;  %v433_v10 = vsub.f32 %v369_v5, %v401_v6  ;;  %v402_v11 = vld [vmem:[%s1447_s22 + $0x10] sm:$0xff]  ;;  %v371_v12 = vld [vmem:[%s1439_s9 + $0x18] sm:$0xff]  ;;  %p1672_p8 = scmp.ne.s32.totalorder %s1668_s27, 0 }
  0xaa   : > { %v504_v4 = vunpack.c.0.s8 %v496_v2  ;;  %v505_v7 = vunpack.c.1.s8 %v496_v2  ;;  %v506_v9 = vunpack.c.2.s8 %v496_v2  ;;  %v403_v13 = vld [vmem:[%s1447_s22 + $0x18] sm:$0xff]  ;;  %v507_v14 = vunpack.c.3.s8 %v496_v2  ;;  %v372_v19 = vld [vmem:[%s1439_s9 + $0x20] sm:$0xff]  ;;  %v497_v25 = vld [vmem:[%s1456_s20 + $0x8] sm:$0xff]  ;;  %s865_s23 = sshll.u32 (%p1672_p8), %s1133_s16, 2  ;;  %s866_s28 = sshll.u32 (%p1672_p8), %s1129_s15, 3 }
  0xab   : > { %v464_v15 = vand.u32 2147483647, %v432_v3  ;;  %v434_v18 = vsub.f32 %v370_v8, %v402_v11  ;;  %v404_v20 = vld [vmem:[%s1447_s22 + $0x20] sm:$0xff]  ;;  %v465_v21 = vand.u32 2147483647, %v433_v10  ;;  %v435_v23 = vsub.f32 %v371_v12, %v403_v13  ;;  %v373_v26 = vld [vmem:[%s1439_s9 + $0x28] sm:$0xff] }
  0xac   : > { %v536_v16 = vand.u32 255, %v504_v4  ;;  %v537_v17 = vand.u32 255, %v505_v7  ;;  %v538_v22 = vand.u32 255, %v506_v9  ;;  %v539_v24 = vand.u32 255, %v507_v14  ;;  %v405_v31 = vld [vmem:[%s1447_s22 + $0x28] sm:$0xff]  ;;  %v374_v32 = vld [vmem:[%s1439_s9 + $0x30] sm:$0xff] }
  0xad   : > { %v466_v29 = vand.u32 2147483647, %v434_v18  ;;  %v436_v30 = vsub.f32 %v372_v19, %v404_v20  ;;  %v467_v34 = vand.u32 2147483647, %v435_v23  ;;  %v508_v36 = vunpack.c.0.s8 %v497_v25  ;;  %v406_v37 = vld [vmem:[%s1447_s22 + $0x30] sm:$0xff]  ;;  %v375_v38 = vld [vmem:[%s1439_s9 + $0x38] sm:$0xff] }
  0xae   : > { %v568_v27 = vcvt.s32.f32 %v536_v16  ;;  %v569_v28 = vcvt.s32.f32 %v537_v17  ;;  %v570_v33 = vcvt.s32.f32 %v538_v22  ;;  %v571_v35 = vcvt.s32.f32 %v539_v24  ;;  %v407_v39 = vld [vmem:[%s1447_s22 + $0x38] sm:$0xff]  ;;  %v376_v44 = vld [vmem:[%s1439_s9 + $0x40] sm:$0xff]  ;;  %v1477_v50 = vld [vmem:[%s1456_s20 + $0x10] sm:$0xff]  ;;  %s674_s6 = ssub.s32 (%p1672_p8), 5, %s865_s23  ;;  %s678_s12 = ssub.s32 (%p1672_p8), 55, %s866_s28 }
  0xaf   : > { %v468_v42 = vand.u32 2147483647, %v436_v30  ;;  %v437_v43 = vsub.f32 %v373_v26, %v405_v31  ;;  %v408_v45 = vld [vmem:[%s1447_s22 + $0x40] sm:$0xff]  ;;  %v540_v48 = vand.u32 255, %v508_v36  ;;  %v509_v49 = vunpack.c.1.s8 %v497_v25  ;;  %v377_v59 = vld [vmem:[%s1439_s9 + $0x48] sm:$0xff]  ;;  %v378_v61 = vld [vmem:[%s1439_s9 + $0x50] sm:$0xff] }
  0xb0   : > { %v600_v40 = vmul.f32 %v568_v27, %v464_v15  ;;  %v601_v41 = vmul.f32 %v569_v28, %v465_v21  ;;  %v602_v46 = vmul.f32 %v570_v33, %v466_v29  ;;  %v603_v47 = vmul.f32 %v571_v35, %v467_v34  ;;  %v409_v60 = vld [vmem:[%s1447_s22 + $0x48] sm:$0xff]  ;;  %v410_v2 = vld [vmem:[%s1447_s22 + $0x50] sm:$0xff]  ;;  %v379_v11 = vld [vmem:[%s1439_s9 + $0x58] sm:$0xff]  ;;  %p675_p3 = scmp.lt.s32.totalorder (%p1672_p8), %s674_s6, 4  ;;  %p679_p1 = scmp.lt.s32.totalorder (%p1672_p8), %s678_s12, 8 }
  0xb1   : > { %v469_v51 = vand.u32 2147483647, %v437_v43  ;;  %v438_v52 = vsub.f32 %v374_v32, %v406_v37  ;;  %v510_v53 = vunpack.c.2.s8 %v497_v25  ;;  %v439_v54 = vsub.f32 %v375_v38, %v407_v39  ;;  %v411_v12 = vld [vmem:[%s1447_s22 + $0x58] sm:$0xff]  ;;  %v380_v17 = vld [vmem:[%s1439_s9 + $0x60] sm:$0xff]  ;;  %v381_v24 = vld [vmem:[%s1439_s9 + $0x68] sm:$0xff] }
  0xb2   : > { %632 = vst [vmem:[%s1480_s26] sm:$0xff] %v600_v40  ;;  %633 = vst [vmem:[%s1480_s26 + $0x8] sm:$0xff] %v601_v41  ;;  %v572_v55 = vcvt.s32.f32 %v540_v48  ;;  %v541_v56 = vand.u32 255, %v509_v49  ;;  %v511_v57 = vunpack.c.3.s8 %v497_v25  ;;  %v440_v58 = vsub.f32 %v376_v44, %v408_v45  ;;  %v412_v18 = vld [vmem:[%s1447_s22 + $0x60] sm:$0xff]  ;;  %v499_v23 = vld [vmem:[%s1456_s20 + $0x18] sm:$0xff] }
  0xb3   : > { %634 = vst [vmem:[%s1480_s26 + $0x10] sm:$0xff] %v602_v46  ;;  %635 = vst [vmem:[%s1480_s26 + $0x18] sm:$0xff] %v603_v47  ;;  %v470_v62 = vand.u32 2147483647, %v438_v52  ;;  %v542_v63 = vand.u32 255, %v510_v53  ;;  %v512_v1 = vunpack.c.0.s8 %v1477_v50  ;;  %v441_v9 = vsub.f32 %v377_v59, %v409_v60  ;;  %v413_v25 = vld [vmem:[%s1447_s22 + $0x68] sm:$0xff] }
  0xb4   : > { %v471_v0 = vand.u32 2147483647, %v439_v54  ;;  %v604_v3 = vmul.f32 %v572_v55, %v468_v42  ;;  %v573_v4 = vcvt.s32.f32 %v541_v56  ;;  %v543_v5 = vand.u32 255, %v511_v57  ;;  %v382_v34 = vld [vmem:[%s1439_s9 + $0x70] sm:$0xff]  ;;  %v383_v40 = vld [vmem:[%s1439_s9 + $0x78] sm:$0xff]  ;;  %v384_v46 = vld [vmem:[%s1439_s9 + $0x80] sm:$0xff] }
  0xb5   : > { %v472_v6 = vand.u32 2147483647, %v440_v58  ;;  %v574_v7 = vcvt.s32.f32 %v542_v63  ;;  %v544_v8 = vand.u32 255, %v512_v1  ;;  %v513_v10 = vunpack.c.1.s8 %v1477_v50  ;;  %v414_v35 = vld [vmem:[%s1447_s22 + $0x70] sm:$0xff]  ;;  %v415_v41 = vld [vmem:[%s1447_s22 + $0x78] sm:$0xff]  ;;  %v416_v47 = vld [vmem:[%s1447_s22 + $0x80] sm:$0xff] }
  0xb6   : > { %636 = vst [vmem:[%s1480_s26 + $0x20] sm:$0xff] %v604_v3  ;;  %v605_v13 = vmul.f32 %v573_v4, %v469_v51  ;;  %v575_v14 = vcvt.s32.f32 %v543_v5  ;;  %v442_v15 = vsub.f32 %v378_v61, %v410_v2  ;;  %v514_v16 = vunpack.c.2.s8 %v1477_v50  ;;  %v500_v56 = vld [vmem:[%s1456_s20 + $0x20] sm:$0xff]  ;;  %v385_v61 = vld [vmem:[%s1439_s9 + $0x88] sm:$0xff]  ;;  %v386_v3 = vld [vmem:[%s1439_s9 + $0x90] sm:$0xff] }
  0xb7   : > { %v606_v19 = vmul.f32 %v574_v7, %v470_v62  ;;  %v576_v20 = vcvt.s32.f32 %v544_v8  ;;  %v473_v21 = vand.u32 2147483647, %v441_v9  ;;  %v545_v22 = vand.u32 255, %v513_v10  ;;  %v417_v62 = vld [vmem:[%s1447_s22 + $0x88] sm:$0xff]  ;;  %v418_v4 = vld [vmem:[%s1447_s22 + $0x90] sm:$0xff]  ;;  %v387_v9 = vld [vmem:[%s1439_s9 + $0x98] sm:$0xff] }
  0xb8   : > { %637 = vst [vmem:[%s1480_s26 + $0x28] sm:$0xff] %v605_v13  ;;  %v607_v26 = vmul.f32 %v575_v14, %v471_v0  ;;  %v474_v27 = vand.u32 2147483647, %v442_v15  ;;  %v546_v28 = vand.u32 255, %v514_v16  ;;  %v443_v29 = vsub.f32 %v379_v11, %v411_v12  ;;  %v419_v10 = vld [vmem:[%s1447_s22 + $0x98] sm:$0xff] }
  0xb9   : > { %638 = vst [vmem:[%s1480_s26 + $0x30] sm:$0xff] %v606_v19  ;;  %v608_v30 = vmul.f32 %v576_v20, %v472_v6  ;;  %v577_v31 = vcvt.s32.f32 %v545_v22  ;;  %v515_v32 = vunpack.c.3.s8 %v1477_v50  ;;  %v444_v33 = vsub.f32 %v380_v17, %v412_v18  ;;  %v388_v19 = vld [vmem:[%s1439_s9 + $0xa0] sm:$0xff] }
  0xba   : > { %639 = vst [vmem:[%s1480_s26 + $0x38] sm:$0xff] %v607_v26  ;;  %v578_v36 = vcvt.s32.f32 %v546_v28  ;;  %v475_v37 = vand.u32 2147483647, %v443_v29  ;;  %v516_v38 = vunpack.c.0.s8 %v499_v23  ;;  %v445_v39 = vsub.f32 %v381_v24, %v413_v25  ;;  %v420_v20 = vld [vmem:[%s1447_s22 + $0xa0] sm:$0xff]  ;;  %v501_v25 = vld [vmem:[%s1456_s20 + $0x28] sm:$0xff] }
  0xbb   : > { %640 = vst [vmem:[%s1480_s26 + $0x40] sm:$0xff] %v608_v30  ;;  %v609_v42 = vmul.f32 %v577_v31, %v473_v21  ;;  %v547_v43 = vand.u32 255, %v515_v32  ;;  %v476_v44 = vand.u32 2147483647, %v444_v33  ;;  %v517_v45 = vunpack.c.1.s8 %v499_v23  ;;  %v389_v26 = vld [vmem:[%s1439_s9 + $0xa8] sm:$0xff] }
  0xbc   : > { %v610_v48 = vmul.f32 %v578_v36, %v474_v27  ;;  %v548_v49 = vand.u32 255, %v516_v38  ;;  %v477_v50 = vand.u32 2147483647, %v445_v39  ;;  %v446_v51 = vsub.f32 %v382_v34, %v414_v35  ;;  %v421_v27 = vld [vmem:[%s1447_s22 + $0xa8] sm:$0xff]  ;;  %v390_v36 = vld [vmem:[%s1439_s9 + $0xb0] sm:$0xff] }
  0xbd   : > { %641 = vst [vmem:[%s1480_s26 + $0x48] sm:$0xff] %v609_v42  ;;  %v579_v52 = vcvt.s32.f32 %v547_v43  ;;  %v549_v53 = vand.u32 255, %v517_v45  ;;  %v518_v54 = vunpack.c.2.s8 %v499_v23  ;;  %v447_v55 = vsub.f32 %v383_v40, %v415_v41  ;;  %v391_v42 = vld [vmem:[%s1439_s9 + $0xb8] sm:$0xff] }
  0xbe   : > { %642 = vst [vmem:[%s1480_s26 + $0x50] sm:$0xff] %v610_v48  ;;  %v580_v57 = vcvt.s32.f32 %v548_v49  ;;  %v478_v58 = vand.u32 2147483647, %v446_v51  ;;  %v519_v59 = vunpack.c.3.s8 %v499_v23  ;;  %v448_v60 = vsub.f32 %v384_v46, %v416_v47  ;;  %v423_v43 = vld [vmem:[%s1447_s22 + $0xb8] sm:$0xff]  ;;  %v392_v48 = vld [vmem:[%s1439_s9 + $0xc0] sm:$0xff] }
  0xbf   : > { %v611_v63 = vmul.f32 %v579_v52, %v475_v37  ;;  %v581_v0 = vcvt.s32.f32 %v549_v53  ;;  %v550_v1 = vand.u32 255, %v518_v54  ;;  %v479_v2 = vand.u32 2147483647, %v447_v55  ;;  %v422_v37 = vld [vmem:[%s1447_s22 + $0xb0] sm:$0xff]  ;;  %v424_v49 = vld [vmem:[%s1447_s22 + $0xc0] sm:$0xff] }
  0xc0   : > { %v612_v5 = vmul.f32 %v580_v57, %v476_v44  ;;  %v551_v6 = vand.u32 255, %v519_v59  ;;  %v480_v7 = vand.u32 2147483647, %v448_v60  ;;  %v520_v8 = vunpack.c.0.s8 %v500_v56 }
  0xc1   : > { %643 = vst [vmem:[%s1480_s26 + $0x58] sm:$0xff] %v611_v63  ;;  %v613_v11 = vmul.f32 %v581_v0, %v477_v50  ;;  %v582_v12 = vcvt.s32.f32 %v550_v1  ;;  %v449_v13 = vsub.f32 %v385_v61, %v417_v62  ;;  %v521_v14 = vunpack.c.1.s8 %v500_v56  ;;  %v393_v63 = vld [vmem:[%s1439_s9 + $0xc8] sm:$0xff] }
  0xc2   : > { %644 = vst [vmem:[%s1480_s26 + $0x60] sm:$0xff] %v612_v5  ;;  %v583_v15 = vcvt.s32.f32 %v551_v6  ;;  %v552_v16 = vand.u32 255, %v520_v8  ;;  %v450_v17 = vsub.f32 %v386_v3, %v418_v4  ;;  %v522_v18 = vunpack.c.2.s8 %v500_v56  ;;  %v425_v0 = vld [vmem:[%s1447_s22 + $0xc8] sm:$0xff]  ;;  %v394_v5 = vld [vmem:[%s1439_s9 + $0xd0] sm:$0xff] }
  0xc3   : > { %645 = vst [vmem:[%s1480_s26 + $0x68] sm:$0xff] %v613_v11  ;;  %v614_v21 = vmul.f32 %v582_v12, %v478_v58  ;;  %v481_v22 = vand.u32 2147483647, %v449_v13  ;;  %v553_v23 = vand.u32 255, %v521_v14  ;;  %v451_v24 = vsub.f32 %v387_v9, %v419_v10  ;;  %v502_v58 = vld [vmem:[%s1456_s20 + $0x30] sm:$0xff]  ;;  %v395_v11 = vld [vmem:[%s1439_s9 + $0xd8] sm:$0xff] }
  0xc4   : > { %v615_v28 = vmul.f32 %v583_v15, %v479_v2  ;;  %v584_v29 = vcvt.s32.f32 %v552_v16  ;;  %v482_v30 = vand.u32 2147483647, %v450_v17  ;;  %v554_v31 = vand.u32 255, %v522_v18  ;;  %v426_v6 = vld [vmem:[%s1447_s22 + $0xd0] sm:$0xff]  ;;  %v427_v12 = vld [vmem:[%s1447_s22 + $0xd8] sm:$0xff] }
  0xc5   : > { %646 = vst [vmem:[%s1480_s26 + $0x70] sm:$0xff] %v614_v21  ;;  %v585_v32 = vcvt.s32.f32 %v553_v23  ;;  %v483_v33 = vand.u32 2147483647, %v451_v24  ;;  %v523_v34 = vunpack.c.3.s8 %v500_v56  ;;  %v452_v35 = vsub.f32 %v388_v19, %v420_v20  ;;  %v396_v21 = vld [vmem:[%s1439_s9 + $0xe0] sm:$0xff] }
  0xc6   : > { %647 = vst [vmem:[%s1480_s26 + $0x78] sm:$0xff] %v615_v28  ;;  %v616_v38 = vmul.f32 %v584_v29, %v480_v7  ;;  %v586_v39 = vcvt.s32.f32 %v554_v31  ;;  %v524_v40 = vunpack.c.0.s8 %v501_v25  ;;  %v453_v41 = vsub.f32 %v389_v26, %v421_v27  ;;  %v503_v27 = vld [vmem:[%s1456_s20 + $0x38] sm:$0xff]  ;;  %v397_v28 = vld [vmem:[%s1439_s9 + $0xe8] sm:$0xff] }
  0xc7   : > { %v617_v44 = vmul.f32 %v585_v32, %v481_v22  ;;  %v555_v45 = vand.u32 255, %v523_v34  ;;  %v484_v46 = vand.u32 2147483647, %v452_v35  ;;  %v525_v47 = vunpack.c.1.s8 %v501_v25  ;;  %v428_v22 = vld [vmem:[%s1447_s22 + $0xe0] sm:$0xff]  ;;  %v429_v29 = vld [vmem:[%s1447_s22 + $0xe8] sm:$0xff] }
  0xc8   : > { %648 = vst [vmem:[%s1480_s26 + $0x80] sm:$0xff] %v616_v38  ;;  %v618_v50 = vmul.f32 %v586_v39, %v482_v30  ;;  %v556_v51 = vand.u32 255, %v524_v40  ;;  %v485_v52 = vand.u32 2147483647, %v453_v41  ;;  %v454_v53 = vsub.f32 %v390_v36, %v422_v37  ;;  %v398_v38 = vld [vmem:[%s1439_s9 + $0xf0] sm:$0xff] }
  0xc9   : > { %649 = vst [vmem:[%s1480_s26 + $0x88] sm:$0xff] %v617_v44  ;;  %v587_v54 = vcvt.s32.f32 %v555_v45  ;;  %v557_v55 = vand.u32 255, %v525_v47  ;;  %v526_v56 = vunpack.c.2.s8 %v501_v25  ;;  %v455_v57 = vsub.f32 %v391_v42, %v423_v43  ;;  %v430_v39 = vld [vmem:[%s1447_s22 + $0xf0] sm:$0xff]  ;;  %v399_v44 = vld [vmem:[%s1439_s9 + $0xf8] sm:$0xff] }
  0xca   : > { %650 = vst [vmem:[%s1480_s26 + $0x90] sm:$0xff] %v618_v50  ;;  %v588_v59 = vcvt.s32.f32 %v556_v51  ;;  %v486_v60 = vand.u32 2147483647, %v454_v53  ;;  %v527_v61 = vunpack.c.3.s8 %v501_v25  ;;  %v456_v62 = vsub.f32 %v392_v48, %v424_v49  ;;  %v431_v45 = vld [vmem:[%s1447_s22 + $0xf8] sm:$0xff] }
  0xcb   : > { %v619_v1 = vmul.f32 %v587_v54, %v483_v33  ;;  %v589_v2 = vcvt.s32.f32 %v557_v55  ;;  %v558_v3 = vand.u32 255, %v526_v56  ;;  %v487_v4 = vand.u32 2147483647, %v455_v57 }
  0xcc   : > { %v620_v7 = vmul.f32 %v588_v59, %v484_v46  ;;  %v559_v8 = vand.u32 255, %v527_v61  ;;  %v488_v9 = vand.u32 2147483647, %v456_v62  ;;  %v528_v10 = vunpack.c.0.s8 %v502_v58 }
  0xcd   : > { %651 = vst [vmem:[%s1480_s26 + $0x98] sm:$0xff] %v619_v1  ;;  %v621_v13 = vmul.f32 %v589_v2, %v485_v52  ;;  %v590_v14 = vcvt.s32.f32 %v558_v3  ;;  %v457_v15 = vsub.f32 %v393_v63, %v425_v0  ;;  %v529_v16 = vunpack.c.1.s8 %v502_v58 }
  0xce   : > { %652 = vst [vmem:[%s1480_s26 + $0xa0] sm:$0xff] %v620_v7  ;;  %v591_v17 = vcvt.s32.f32 %v559_v8  ;;  %v560_v18 = vand.u32 255, %v528_v10  ;;  %v458_v19 = vsub.f32 %v394_v5, %v426_v6  ;;  %v530_v20 = vunpack.c.2.s8 %v502_v58 }
  0xcf   : > { %653 = vst [vmem:[%s1480_s26 + $0xa8] sm:$0xff] %v621_v13  ;;  %v622_v23 = vmul.f32 %v590_v14, %v486_v60  ;;  %v489_v24 = vand.u32 2147483647, %v457_v15  ;;  %v561_v25 = vand.u32 255, %v529_v16  ;;  %v459_v26 = vsub.f32 %v395_v11, %v427_v12 }
  0xd0   : > { %v623_v30 = vmul.f32 %v591_v17, %v487_v4  ;;  %v592_v31 = vcvt.s32.f32 %v560_v18  ;;  %v490_v32 = vand.u32 2147483647, %v458_v19  ;;  %v562_v33 = vand.u32 255, %v530_v20 }
  0xd1   : > { %654 = vst [vmem:[%s1480_s26 + $0xb0] sm:$0xff] %v622_v23  ;;  %v593_v34 = vcvt.s32.f32 %v561_v25  ;;  %v491_v35 = vand.u32 2147483647, %v459_v26  ;;  %v531_v36 = vunpack.c.3.s8 %v502_v58  ;;  %v460_v37 = vsub.f32 %v396_v21, %v428_v22 }
  0xd2   : > { %655 = vst [vmem:[%s1480_s26 + $0xb8] sm:$0xff] %v623_v30  ;;  %v624_v40 = vmul.f32 %v592_v31, %v488_v9  ;;  %v594_v41 = vcvt.s32.f32 %v562_v33  ;;  %v532_v42 = vunpack.c.0.s8 %v503_v27  ;;  %v461_v43 = vsub.f32 %v397_v28, %v429_v29 }
  0xd3   : > { %v625_v46 = vmul.f32 %v593_v34, %v489_v24  ;;  %v563_v47 = vand.u32 255, %v531_v36  ;;  %v492_v48 = vand.u32 2147483647, %v460_v37  ;;  %v533_v49 = vunpack.c.1.s8 %v503_v27 }
  0xd4   : > { %656 = vst [vmem:[%s1480_s26 + $0xc0] sm:$0xff] %v624_v40  ;;  %v626_v50 = vmul.f32 %v594_v41, %v490_v32  ;;  %v564_v51 = vand.u32 255, %v532_v42  ;;  %v493_v52 = vand.u32 2147483647, %v461_v43  ;;  %v462_v53 = vsub.f32 %v398_v38, %v430_v39 }
  0xd5   : > { %657 = vst [vmem:[%s1480_s26 + $0xc8] sm:$0xff] %v625_v46  ;;  %v595_v54 = vcvt.s32.f32 %v563_v47  ;;  %v565_v55 = vand.u32 255, %v533_v49  ;;  %v534_v56 = vunpack.c.2.s8 %v503_v27  ;;  %v463_v57 = vsub.f32 %v399_v44, %v431_v45 }
  0xd6   : > { %658 = vst [vmem:[%s1480_s26 + $0xd0] sm:$0xff] %v626_v50  ;;  %v596_v58 = vcvt.s32.f32 %v564_v51  ;;  %v535_v59 = vunpack.c.3.s8 %v503_v27  ;;  %v494_v62 = vand.u32 2147483647, %v462_v53 }
  0xd7   : > { %v627_v60 = vmul.f32 %v595_v54, %v491_v35  ;;  %v597_v61 = vcvt.s32.f32 %v565_v55  ;;  %v566_v63 = vand.u32 255, %v534_v56  ;;  %v495_v1 = vand.u32 2147483647, %v463_v57 }
  0xd8   : > { %v628_v0 = vmul.f32 %v596_v58, %v492_v48  ;;  %v567_v2 = vand.u32 255, %v535_v59  ;;  %671 = sbr.rel (!%p1672_p8) target bundleno = 256 (0x100), region = 48 }
  0xd9   : > { %659 = vst [vmem:[%s1480_s26 + $0xd8] sm:$0xff] %v627_v60  ;;  %v629_v3 = vmul.f32 %v597_v61, %v493_v52  ;;  %v598_v4 = vcvt.s32.f32 %v566_v63 }
  0xda   : > { %660 = vst [vmem:[%s1480_s26 + $0xe0] sm:$0xff] %v628_v0  ;;  %v599_v5 = vcvt.s32.f32 %v567_v2 }
  0xdb   : > { %661 = vst [vmem:[%s1480_s26 + $0xe8] sm:$0xff] %v629_v3  ;;  %v630_v6 = vmul.f32 %v598_v4, %v494_v62 }
  0xdc   : > { %v631_v7 = vmul.f32 %v599_v5, %v495_v1 }
  0xdd   : > { %662 = vst [vmem:[%s1480_s26 + $0xf0] sm:$0xff] %v630_v6 }
  0xde   : > { %663 = vst [vmem:[%s1480_s26 + $0xf8] sm:$0xff] %v631_v7 }
  0xdf   : > { %s1706_s6 = smov (!%p675_p3, %s674_s6), 4  ;;  %s1708_s12 = smov (!%p679_p1, %s678_s12), 8 }
  0xe0   : > { %s867_s11 = sshll.u32 %s1706_s6, 7 }
  0xe1   : > { %s1577_s4 = smul.u32 %s867_s11, %s1708_s12 }
  0xe3   : > { %s683_s7 = ssub.s32 4096, %s1577_s4 }
  0xe4   : > { %684 = vsyncadd %s665_s3, %s683_s7  ;;  %p868_p4 = scmp.ne.s32.totalorder %s1577_s4, 0  ;;  %s877_s15 = smul.u32 220, %s1133_s16 }
  0xe5   : > { %s871_s27 = sshll.u32 %s1708_s12, 3  ;;  %s692_s29 = sshll.u32 %s1480_s26, 4  ;;  %s1588_s29 = int_to_ptr.vmem [resolvable:$true] %s692_s29 }
  0xe6   : > { %s687_s21 = sadd.s32 %s877_s15, %s866_s28  ;;  %s691_s10 = smul.u32 %s871_s27, %s1706_s6 }
  0xe7   : > { %s870_s25 = sshll.u32 %s687_s21, 7  ;;  %s1673_s30 = sld [smem:[#allocation17_spill]] }
  0xe8   : > { %s1595_s8 = sshll.u32 %s691_s10, 4  ;;  %s1156_s20 = smov [#allocation8]  }
  0xe9   : > { %s1043_s16 = scalar_lea.vmem %s1588_s29, %s1595_s8  ;;  %s1047_s26 = sshll.u32 %s1156_s20, 4  ;;  %s1048_s26 = int_to_ptr.vmem [resolvable:$false] %s1047_s26 }
  0xea   : > { %p1044_p5 = scmp.ne.s32.totalorder %s1588_s29, %s1043_s16  ;;  %s1049_s23 = scalar_lea.vmem %s1048_s26, 8192 }
  0xeb   : > { %p1050_p2 = scmp.lt.s32.totalorder %s1588_s29, %s1048_s26  ;;  %p1051_p10 = scmp.lt.s32.totalorder %s1049_s23, %s1043_s16 }
  0xec   : > { %p1045_p0 = pnand %p1044_p5, %p868_p4 }
  0xed   : > { %s1593_s22 = scalar_lea.hbm %s1673_s30, %s870_s25  ;;  %p1052_p9 = por %p1051_p10, %p1050_p2 }
  0xee   : > { %p1046_p7 = pneg %p1045_p0 }
  0xf0   : > { %p1053_p12 = pnand %p1052_p9, %p1046_p7 }
  0xf2   : > { %1056 = shalt.err (!%p1053_p12)
}
  0xf3   : > { %s1057_s28 = scalar_lea.hbm %s1593_s22, %s1595_s8  ;;  %s1061_s7 = scalar_lea.hbm %s1673_s30, 35200 }
  0xf4   : > { %p1058_p11 = scmp.ne.s32.totalorder %s1593_s22, %s1057_s28  ;;  %p1062_p8 = scmp.lt.u32.totalorder %s1593_s22, %s1673_s30 }
  0xf5   : > { %p1063_p3 = scmp.lt.u32.totalorder %s1061_s7, %s1057_s28  ;;  %p1065_p5 = scmp.lt.u32.totalorder %s1057_s28, %s1593_s22 }
  0xf6   : > { %p1059_p6 = pnand %p1058_p11, %p868_p4 }
  0xf7   : > { %p1064_p1 = por %p1063_p3, %p1062_p8 }
  0xf8   : > { %p1060_p13 = pneg %p1059_p6 }
  0xf9   : > { %p1066_p0 = por %p1065_p5, %p1064_p1 }
  0xfb   : > { %p1067_p7 = pnand %p1066_p0, %p1060_p13 }
  0xfd   : > { %1070 = shalt.err (!%p1067_p7)
}
  0xfe   : > { %s1157_s10 = smov 1024   ;;  %s1158_s25 = smov 7040  }
  0xff   : > { %698 = dma.vmem_to_hbm [thread:$0]  (%p868_p4), %s1588_s29, %s1595_s8, %s1593_s22, %s665_s3, %s1157_s10, %s1158_s25, %s871_s27  }
 0x100 PF: > { %s1674_s9 = sld [smem:[#allocation12_spill]]  ;;  %s1675_s24 = sld [smem:[#allocation15_spill]] }
 0x101   : > { %p886_p2 = scmp.ge.s32.totalorder %s1145_s19, 2 }
 0x106   : > { %s707_s16 = sand.u32 1, %s1674_s9   ;;  %p1676_p10 = scmp.ne.s32.totalorder %s1675_s24, 0 }
 0x107   : > { %s708_s20 = scalar_lea.sflag [#allocation4], %s707_s16 }
 0x108   : > { %p883_p9 = pnand %p886_p2, %p1676_p10 }
 0x10a   : > { %1112 = dma.done.wait (!%p883_p9), %s708_s20, 4096  }
 0x10b   : > { %1114 = vsyncadd (!%p883_p9), %s708_s20, 4294963200  ;;  %s22_s19 = sadd.s32 1, %s1145_s19   ;;  %s1677_s4 = sld [smem:[#allocation16_spill]] }
 0x10c   : > { %p19_p12 = scmp.ge.s32.totalorder %s22_s19, 16   ;;  %s1678_s5 = sld [smem:[#allocation13_spill]] }
 0x10d   : > { %s1679_s3 = sld [smem:[#allocation14_spill]]  ;;  %s1680_s12 = smov %s1121_s13 }
 0x10e   : > { %s1681_s13 = smov %s1125_s14  ;;  %s1683_s15 = smov %s1137_s17 }
 0x10f   : > { %s1684_s16 = smov %s1141_s18  ;;  %21 = sbr.rel (!%p19_p12) target bundleno = 11 (0xb), region = 101 }
 0x111   : > { %s1682_s14 = smov %s1677_s4 }
 0x112   : > { %s1685_s17 = smov %s1678_s5 }
 0x113   : > { %s1686_s18 = smov %s1679_s3 }
 0x116   :  { %713 = vsyncpa [#allocation3], 1 }
 0x117   :  { %715 = vsyncpa [#allocation3 + $0x1], 1 }
 0x118   :  { %716 = vsyncpa [#allocation6], 1 }
 0x119   :  { %718 = vsyncpa [#allocation6 + $0x1], 1 }
 0x11a   :  { %719 = vsyncpa [#allocation4], 1 }
 0x11b   :  { %721 = vsyncpa [#allocation4 + $0x1], 1 }

</bundles_post_ra>
